<compile_context>
chip_gen: v7x
topology: tpu7x:2x2x1
jax: 0.10.0
libtpu: 0.0.40
codegen_flags: <defaults>
</compile_context>

<pallas_src>
import functools

import jax
import jax.numpy as jnp
import numpy as np
from jax.experimental import pallas as pl
from jax.experimental.pallas import tpu as pltpu

EPS = 1e-8
_LOG_CLAMP = -100.0   # PyTorch nn.BCELoss clamps log terms at -100.
_N_PARTIALS = 5       # offdiag_sum, mask_sum, diag_loss_sum, sp_pos_sum, sp_neg_sum


def _avol_partials_kernel(scores_ref, mask_ref, out_ref, *, tile_rows, bs):
    half = bs // 2
    r0 = pl.program_id(0) * tile_rows

    scores = scores_ref[...].astype(jnp.float32)   # (tile_rows, bs)
    mask = mask_ref[...].astype(jnp.float32)       # int8/bool/f32 -> f32 in-kernel

    row_g = jax.lax.broadcasted_iota(jnp.int32, (tile_rows, bs), 0) + r0
    col = jax.lax.broadcasted_iota(jnp.int32, (tile_rows, bs), 1)
    is_diag = col == row_g                                   # positives (label 1)
    neg_col = jnp.where(row_g < half, row_g + half, row_g - half)
    is_sneg = col == neg_col                                 # spatial negatives

    # ---------------- semantic loss, off-diagonal part (label 0) ----------------
    # The ONLY full-matrix transcendental in the kernel.
    s = jnp.clip(scores * mask, 0.0, 1.0)
    log_1ms = jnp.maximum(jnp.log(1.0 - s), _LOG_CLAMP)
    loss_off = jnp.where(is_diag, 0.0, -mask * log_1ms)      # already re-masked

    offdiag_sum = jnp.sum(loss_off)
    mask_sum = jnp.sum(mask)

    # ------------- bs-length strips via select + row-reduce (no big logs) -------
    diag_scores = jnp.sum(jnp.where(is_diag, scores, 0.0), axis=1, keepdims=True)
    diag_mask = jnp.sum(jnp.where(is_diag, mask, 0.0), axis=1, keepdims=True)
    sneg_scores = jnp.sum(jnp.where(is_sneg, scores, 0.0), axis=1, keepdims=True)

    # semantic loss, diagonal part (label 1); logs only on (tile_rows, 1) strips
    s_diag = jnp.clip(diag_scores * diag_mask, 0.0, 1.0)
    diag_loss_sum = jnp.sum(-diag_mask * jnp.maximum(jnp.log(s_diag), _LOG_CLAMP))

    # spatial loss: positives = main diagonal (label 1),
    #               negatives = +-bs/2 shifted diagonals (label 0).
    # Clip to [0,1] for numerical safety (nn.BCELoss requires inputs in [0,1]).
    sp_pos = jnp.clip(diag_scores, 0.0, 1.0)
    sp_neg = jnp.clip(sneg_scores, 0.0, 1.0)
    sp_pos_sum = jnp.sum(-jnp.maximum(jnp.log(sp_pos), _LOG_CLAMP))
    sp_neg_sum = jnp.sum(-jnp.maximum(jnp.log(1.0 - sp_neg), _LOG_CLAMP))

    out_ref[0, 0] = offdiag_sum
    out_ref[0, 1] = mask_sum
    out_ref[0, 2] = diag_loss_sum
    out_ref[0, 3] = sp_pos_sum
    out_ref[0, 4] = sp_neg_sum


def _choose_tile_rows(bs, target_block_bytes=2 * 1024 * 1024):
    """Largest row tile from a layout-friendly menu (multiples of 32, int8-safe)
    that divides bs and keeps one f32 scores block under ~target bytes."""
    for t in (512, 256, 128, 64, 32):
        if t < bs and bs % t == 0 and t * bs * 4 <= target_block_bytes:
            return t
    return bs   # small / awkward bs: single block covering the full array


def avol_losses_pallas(scores_raw, neg_mask, eps=EPS):
    """Returns (loss_semantic, loss_spatial) scalars (float32)."""
    bs = scores_raw.shape[0]
    assert scores_raw.shape == (bs, bs) and neg_mask.shape == (bs, bs)
    assert bs % 2 == 0, "spatial loss needs an even batch size"
    # NOTE: like the PyTorch reference, the semantic denominators assume the
    # diagonal of neg_mask is all ones, and each row has exactly one +-bs/2
    # spatial-negative partner (so the spatial mean divides by 2*bs).

    tile_rows = _choose_tile_rows(bs)
    num_tiles = bs // tile_rows

    kernel = functools.partial(_avol_partials_kernel, tile_rows=tile_rows, bs=bs)
    partials = pl.pallas_call(
        kernel,
        out_shape=jax.ShapeDtypeStruct((num_tiles, _N_PARTIALS), jnp.float32),
        grid=(num_tiles,),
        in_specs=[
            pl.BlockSpec((tile_rows, bs), lambda i: (i, 0)),
            pl.BlockSpec((tile_rows, bs), lambda i: (i, 0)),
        ],
        out_specs=pl.BlockSpec(
            (1, _N_PARTIALS), lambda i: (i, 0),
            memory_space=pltpu.MemorySpace.SMEM),
        compiler_params=pltpu.CompilerParams(
            dimension_semantics=("parallel",),
            vmem_limit_bytes=48 * 1024 * 1024,
        ),
    )(scores_raw, neg_mask)   # no wrapper-side up-casting

    sums = jnp.sum(partials, axis=0)
    offdiag_sum = sums[0]
    mask_sum = sums[1]
    diag_loss_sum = sums[2]
    sp_pos_sum = sums[3]
    sp_neg_sum = sums[4]

    bs_f = jnp.float32(bs)
    loss_pos = diag_loss_sum / bs_f
    loss_neg = (offdiag_sum + eps) / (mask_sum - bs_f + eps)
    loss_semantic = 0.5 * loss_pos + 0.5 * loss_neg
    loss_spatial = (sp_pos_sum + sp_neg_sum) / (2.0 * bs_f)
    return loss_semantic, loss_spatial


class LossAVOL:
    """JAX/Pallas port of loss_AVOL.forward."""

    def __init__(self, eps=EPS, flip_neg=True, hard_neg=False):
        self.eps = eps
        self.flip_neg = flip_neg
        self.hard_neg = hard_neg

    def __call__(self, scores_raw, neg_mask, alpha=None):
        loss_semantic_v, loss_spatial_v = avol_losses_pallas(
            scores_raw, neg_mask, self.eps)

        if (not self.hard_neg) and self.flip_neg:
            loss_semantic = loss_semantic_v
            loss_spatial = loss_spatial_v
            loss_total = 0.5 * loss_spatial + 0.5 * loss_semantic
        elif self.hard_neg and self.flip_neg:
            loss_semantic = None
            loss_spatial = loss_spatial_v
            loss_total = loss_spatial
        else:
            loss_semantic = loss_semantic_v
            loss_spatial = None
            loss_total = loss_semantic

        loss = {"total": loss_total, "easy": loss_semantic, "hard": loss_spatial}
        loss_perfect = {
            "total": 0.0,
            "random": -1.0 * jnp.log10(jnp.array([0.5], dtype=jnp.float32)),
        }
        return loss, loss_perfect


def _reference_losses(scores_raw, neg_mask, eps=EPS):
    """Pure-JAX reference mirroring the PyTorch module (for the sanity check)."""
    bs = scores_raw.shape[0]
    m = neg_mask.astype(jnp.float32)
    s = jnp.clip(scores_raw.astype(jnp.float32) * m, 0.0, 1.0)
    eye = jnp.eye(bs, dtype=jnp.float32)
    log_s = jnp.maximum(jnp.log(s), _LOG_CLAMP)
    log_1ms = jnp.maximum(jnp.log(1.0 - s), _LOG_CLAMP)
    loss = -(eye * log_s + (1.0 - eye) * log_1ms) * m
    loss_pos = jnp.trace(loss) / bs
    loss_neg = (jnp.sum(loss) - jnp.trace(loss) + eps) / (jnp.sum(m) - bs + eps)
    sem = 0.5 * loss_pos + 0.5 * loss_neg

    half = bs // 2
    d = jnp.diagonal(scores_raw.astype(jnp.float32))
    n = jnp.concatenate([jnp.diagonal(scores_raw[:half, half:]),
                         jnp.diagonal(scores_raw[half:, :half])]).astype(jnp.float32)
    pos_l = -jnp.maximum(jnp.log(d), _LOG_CLAMP)
    neg_l = -jnp.maximum(jnp.log(1.0 - n), _LOG_CLAMP)
    spa = (jnp.sum(pos_l) + jnp.sum(neg_l)) / (2.0 * bs)
    return sem, spa


if __name__ == "__main__":
    key = jax.random.PRNGKey(0)
    k_s, k_m = jax.random.split(key)

    bs = 8  # small, even batch size
    scores_raw = jax.random.uniform(
        k_s, (bs, bs), dtype=jnp.float32, minval=0.05, maxval=0.95)
    # neg_mask: 0/1 matrix with diagonal forced to 1, shipped as int8.
    neg_mask = (jax.random.uniform(k_m, (bs, bs)) > 0.3).astype(jnp.int8)
    neg_mask = jnp.maximum(neg_mask, jnp.eye(bs, dtype=jnp.int8))

    loss_mod = LossAVOL(eps=EPS, flip_neg=True, hard_neg=False)
    loss, loss_perfect = loss_mod(scores_raw, neg_mask)

    jax.block_until_ready(loss["total"])
    jax.block_until_ready(loss["easy"])
    jax.block_until_ready(loss["hard"])

    # Sanity check against a pure-JAX reference of the PyTorch math.
    sem_ref, spa_ref = _reference_losses(scores_raw, neg_mask)
    np.testing.assert_allclose(float(loss["easy"]), float(sem_ref),
                               rtol=1e-5, atol=1e-6)
    np.testing.assert_allclose(float(loss["hard"]), float(spa_ref),
                               rtol=1e-5, atol=1e-6)
    np.testing.assert_allclose(
        float(loss["total"]), 0.5 * float(spa_ref) + 0.5 * float(sem_ref),
        rtol=1e-5, atol=1e-6)

    print("KERNEL_OK")
</pallas_src>

<mosaic_0001>
module attributes {stable_mosaic.version = 11 : i64} {
  func.func @_avol_partials_kernel(%arg0: i32, %arg1: memref<8x8xf32, #tpu.memory_space<vmem>>, %arg2: memref<8x8xi8, #tpu.memory_space<vmem>>, %arg3: memref<1x5xf32, #tpu.memory_space<smem>>) attributes {dimension_semantics = [#tpu.dimension_semantics<parallel>], iteration_bounds = array<i64: 1>, scalar_prefetch = 0 : i64, scratch_operands = 0 : i64, tpu.core_type = #tpu.core_type<tc>, window_params = [{transform_indices = @transform_0, window_bounds = array<i64: 8, 8>}, {transform_indices = @transform_1, window_bounds = array<i64: 8, 8>}, {transform_indices = @transform_2, window_bounds = array<i64: 1, 5>}]} {
    %c8_i32 = arith.constant 8 : i32
    %0 = arith.muli %arg0, %c8_i32 : i32
    %c0 = arith.constant 0 : index
    %c0_0 = arith.constant 0 : index
    %1 = vector.load %arg1[%c0, %c0_0] : memref<8x8xf32, #tpu.memory_space<vmem>>, vector<8x8xf32>
    %c0_1 = arith.constant 0 : index
    %c0_2 = arith.constant 0 : index
    %2 = vector.load %arg2[%c0_1, %c0_2] : memref<8x8xi8, #tpu.memory_space<vmem>>, vector<8x8xi8>
    %3 = arith.sitofp %2 : vector<8x8xi8> to vector<8x8xf32>
    %4 = tpu.iota {dimensions = array<i32: 0>} : vector<8x8xi32>
    %5 = vector.broadcast %0 : i32 to vector<8x8xi32>
    %6 = arith.addi %4, %5 : vector<8x8xi32>
    %7 = tpu.iota {dimensions = array<i32: 1>} : vector<8x8xi32>
    %8 = arith.cmpi eq, %7, %6 : vector<8x8xi32>
    %c4_i32 = arith.constant 4 : i32
    %9 = vector.broadcast %c4_i32 : i32 to vector<8x8xi32>
    %10 = arith.cmpi slt, %6, %9 : vector<8x8xi32>
    %c4_i32_3 = arith.constant 4 : i32
    %11 = vector.broadcast %c4_i32_3 : i32 to vector<8x8xi32>
    %12 = arith.addi %6, %11 : vector<8x8xi32>
    %c4_i32_4 = arith.constant 4 : i32
    %13 = vector.broadcast %c4_i32_4 : i32 to vector<8x8xi32>
    %14 = arith.subi %6, %13 : vector<8x8xi32>
    %15 = arith.select %10, %12, %14 : vector<8x8xi1>, vector<8x8xi32>
    %16 = arith.cmpi eq, %7, %15 : vector<8x8xi32>
    %17 = arith.mulf %1, %3 : vector<8x8xf32>
    %cst = arith.constant 0.000000e+00 : f32
    %cst_5 = arith.constant 1.000000e+00 : f32
    %18 = vector.broadcast %cst : f32 to vector<8x8xf32>
    %19 = arith.maximumf %18, %17 : vector<8x8xf32>
    %20 = vector.broadcast %cst_5 : f32 to vector<8x8xf32>
    %21 = arith.minimumf %20, %19 : vector<8x8xf32>
    %cst_6 = arith.constant 1.000000e+00 : f32
    %22 = vector.broadcast %cst_6 : f32 to vector<8x8xf32>
    %23 = arith.subf %22, %21 : vector<8x8xf32>
    %24 = math.log %23 : vector<8x8xf32>
    %cst_7 = arith.constant -1.000000e+02 : f32
    %25 = vector.broadcast %cst_7 : f32 to vector<8x8xf32>
    %26 = arith.maximumf %24, %25 : vector<8x8xf32>
    %cst_8 = arith.constant 0.000000e+00 : f32
    %27 = vector.broadcast %cst_8 : f32 to vector<8x8xf32>
    %28 = arith.subf %27, %3 : vector<8x8xf32>
    %29 = arith.mulf %28, %26 : vector<8x8xf32>
    %cst_9 = arith.constant 0.000000e+00 : f32
    %30 = vector.broadcast %cst_9 : f32 to vector<8x8xf32>
    %31 = arith.select %8, %30, %29 : vector<8x8xi1>, vector<8x8xf32>
    %32 = vector.shape_cast %31 : vector<8x8xf32> to vector<1x8x8xf32>
    %cst_10 = arith.constant dense<0.000000e+00> : vector<1xf32>
    %33 = vector.multi_reduction <add>, %32, %cst_10 [1, 2] : vector<1x8x8xf32> to vector<1xf32>
    %34 = vector.shape_cast %33 : vector<1xf32> to vector<1x1x1xf32>
    %35 = vector.extract %34[0, 0, 0] : f32 from vector<1x1x1xf32>
    %36 = vector.shape_cast %3 : vector<8x8xf32> to vector<1x8x8xf32>
    %cst_11 = arith.constant dense<0.000000e+00> : vector<1xf32>
    %37 = vector.multi_reduction <add>, %36, %cst_11 [1, 2] : vector<1x8x8xf32> to vector<1xf32>
    %38 = vector.shape_cast %37 : vector<1xf32> to vector<1x1x1xf32>
    %39 = vector.extract %38[0, 0, 0] : f32 from vector<1x1x1xf32>
    %cst_12 = arith.constant 0.000000e+00 : f32
    %40 = vector.broadcast %cst_12 : f32 to vector<8x8xf32>
    %41 = arith.select %8, %1, %40 : vector<8x8xi1>, vector<8x8xf32>
    %cst_13 = arith.constant dense<0.000000e+00> : vector<8xf32>
    %42 = vector.multi_reduction <add>, %41, %cst_13 [1] : vector<8x8xf32> to vector<8xf32>
    %43 = vector.shape_cast %42 : vector<8xf32> to vector<8x1xf32>
    %cst_14 = arith.constant 0.000000e+00 : f32
    %44 = vector.broadcast %cst_14 : f32 to vector<8x8xf32>
    %45 = arith.select %8, %3, %44 : vector<8x8xi1>, vector<8x8xf32>
    %cst_15 = arith.constant dense<0.000000e+00> : vector<8xf32>
    %46 = vector.multi_reduction <add>, %45, %cst_15 [1] : vector<8x8xf32> to vector<8xf32>
    %47 = vector.shape_cast %46 : vector<8xf32> to vector<8x1xf32>
    %cst_16 = arith.constant 0.000000e+00 : f32
    %48 = vector.broadcast %cst_16 : f32 to vector<8x8xf32>
    %49 = arith.select %16, %1, %48 : vector<8x8xi1>, vector<8x8xf32>
    %cst_17 = arith.constant dense<0.000000e+00> : vector<8xf32>
    %50 = vector.multi_reduction <add>, %49, %cst_17 [1] : vector<8x8xf32> to vector<8xf32>
    %51 = vector.shape_cast %50 : vector<8xf32> to vector<8x1xf32>
    %52 = arith.mulf %43, %47 : vector<8x1xf32>
    %cst_18 = arith.constant 0.000000e+00 : f32
    %cst_19 = arith.constant 1.000000e+00 : f32
    %53 = vector.broadcast %cst_18 : f32 to vector<8x1xf32>
    %54 = arith.maximumf %53, %52 : vector<8x1xf32>
    %55 = vector.broadcast %cst_19 : f32 to vector<8x1xf32>
    %56 = arith.minimumf %55, %54 : vector<8x1xf32>
    %cst_20 = arith.constant 0.000000e+00 : f32
    %57 = vector.broadcast %cst_20 : f32 to vector<8x1xf32>
    %58 = arith.subf %57, %47 : vector<8x1xf32>
    %59 = math.log %56 : vector<8x1xf32>
    %cst_21 = arith.constant -1.000000e+02 : f32
    %60 = vector.broadcast %cst_21 : f32 to vector<8x1xf32>
    %61 = arith.maximumf %59, %60 : vector<8x1xf32>
    %62 = arith.mulf %58, %61 : vector<8x1xf32>
    %63 = vector.shape_cast %62 : vector<8x1xf32> to vector<1x8x1xf32>
    %cst_22 = arith.constant dense<0.000000e+00> : vector<1xf32>
    %64 = vector.multi_reduction <add>, %63, %cst_22 [1, 2] : vector<1x8x1xf32> to vector<1xf32>
    %65 = vector.shape_cast %64 : vector<1xf32> to vector<1x1x1xf32>
    %66 = vector.extract %65[0, 0, 0] : f32 from vector<1x1x1xf32>
    %cst_23 = arith.constant 0.000000e+00 : f32
    %cst_24 = arith.constant 1.000000e+00 : f32
    %67 = vector.broadcast %cst_23 : f32 to vector<8x1xf32>
    %68 = arith.maximumf %67, %43 : vector<8x1xf32>
    %69 = vector.broadcast %cst_24 : f32 to vector<8x1xf32>
    %70 = arith.minimumf %69, %68 : vector<8x1xf32>
    %cst_25 = arith.constant 0.000000e+00 : f32
    %cst_26 = arith.constant 1.000000e+00 : f32
    %71 = vector.broadcast %cst_25 : f32 to vector<8x1xf32>
    %72 = arith.maximumf %71, %51 : vector<8x1xf32>
    %73 = vector.broadcast %cst_26 : f32 to vector<8x1xf32>
    %74 = arith.minimumf %73, %72 : vector<8x1xf32>
    %75 = math.log %70 : vector<8x1xf32>
    %cst_27 = arith.constant -1.000000e+02 : f32
    %76 = vector.broadcast %cst_27 : f32 to vector<8x1xf32>
    %77 = arith.maximumf %75, %76 : vector<8x1xf32>
    %cst_28 = arith.constant 0.000000e+00 : f32
    %78 = vector.broadcast %cst_28 : f32 to vector<8x1xf32>
    %79 = arith.subf %78, %77 : vector<8x1xf32>
    %80 = vector.shape_cast %79 : vector<8x1xf32> to vector<1x8x1xf32>
    %cst_29 = arith.constant dense<0.000000e+00> : vector<1xf32>
    %81 = vector.multi_reduction <add>, %80, %cst_29 [1, 2] : vector<1x8x1xf32> to vector<1xf32>
    %82 = vector.shape_cast %81 : vector<1xf32> to vector<1x1x1xf32>
    %83 = vector.extract %82[0, 0, 0] : f32 from vector<1x1x1xf32>
    %cst_30 = arith.constant 1.000000e+00 : f32
    %84 = vector.broadcast %cst_30 : f32 to vector<8x1xf32>
    %85 = arith.subf %84, %74 : vector<8x1xf32>
    %86 = math.log %85 : vector<8x1xf32>
    %cst_31 = arith.constant -1.000000e+02 : f32
    %87 = vector.broadcast %cst_31 : f32 to vector<8x1xf32>
    %88 = arith.maximumf %86, %87 : vector<8x1xf32>
    %cst_32 = arith.constant 0.000000e+00 : f32
    %89 = vector.broadcast %cst_32 : f32 to vector<8x1xf32>
    %90 = arith.subf %89, %88 : vector<8x1xf32>
    %91 = vector.shape_cast %90 : vector<8x1xf32> to vector<1x8x1xf32>
    %cst_33 = arith.constant dense<0.000000e+00> : vector<1xf32>
    %92 = vector.multi_reduction <add>, %91, %cst_33 [1, 2] : vector<1x8x1xf32> to vector<1xf32>
    %93 = vector.shape_cast %92 : vector<1xf32> to vector<1x1x1xf32>
    %94 = vector.extract %93[0, 0, 0] : f32 from vector<1x1x1xf32>
    %c0_34 = arith.constant 0 : index
    %c0_35 = arith.constant 0 : index
    %95 = memref.load %arg3[%c0_34, %c0_35] : memref<1x5xf32, #tpu.memory_space<smem>>
    memref.store %35, %arg3[%c0_34, %c0_35] : memref<1x5xf32, #tpu.memory_space<smem>>
    %c0_36 = arith.constant 0 : index
    %c1 = arith.constant 1 : index
    %96 = memref.load %arg3[%c0_36, %c1] : memref<1x5xf32, #tpu.memory_space<smem>>
    memref.store %39, %arg3[%c0_36, %c1] : memref<1x5xf32, #tpu.memory_space<smem>>
    %c0_37 = arith.constant 0 : index
    %c2 = arith.constant 2 : index
    %97 = memref.load %arg3[%c0_37, %c2] : memref<1x5xf32, #tpu.memory_space<smem>>
    memref.store %66, %arg3[%c0_37, %c2] : memref<1x5xf32, #tpu.memory_space<smem>>
    %c0_38 = arith.constant 0 : index
    %c3 = arith.constant 3 : index
    %98 = memref.load %arg3[%c0_38, %c3] : memref<1x5xf32, #tpu.memory_space<smem>>
    memref.store %83, %arg3[%c0_38, %c3] : memref<1x5xf32, #tpu.memory_space<smem>>
    %c0_39 = arith.constant 0 : index
    %c4 = arith.constant 4 : index
    %99 = memref.load %arg3[%c0_39, %c4] : memref<1x5xf32, #tpu.memory_space<smem>>
    memref.store %94, %arg3[%c0_39, %c4] : memref<1x5xf32, #tpu.memory_space<smem>>
    return
  }
  func.func @transform_0(%arg0: i32) -> (i32, i32) {
    %c0_i32 = arith.constant 0 : i32
    %c0_i32_0 = arith.constant 0 : i32
    return %arg0, %c0_i32 : i32, i32
  }
  func.func @transform_1(%arg0: i32) -> (i32, i32) {
    %c0_i32 = arith.constant 0 : i32
    %c0_i32_0 = arith.constant 0 : i32
    return %arg0, %c0_i32 : i32, i32
  }
  func.func @transform_2(%arg0: i32) -> (i32, i32) {
    %c0_i32 = arith.constant 0 : i32
    %c0_i32_0 = arith.constant 0 : i32
    return %arg0, %c0_i32 : i32, i32
  }
}

</mosaic_0001>

<bundles_post_ra>
// kernel: tpu_custom_call.1
= control target key start
LH: loop header
LB: loop body
LE: loop exit
PB: predicated region body
PF: predicated region fallthrough
CT: control target
= control target key end

     0   :  { %7 = vsyncpa [#allocation3], 0  ;;  %s269_s0 = inlined_call_operand.hbm [shape: f32[8,8], index: 0, kind: input, shape index: {}]   ;;  %s270_s1 = inlined_call_operand.vmem [shape: s8[8,8], index: 1, kind: input, shape index: {}]   ;;  %s271_s2 = inlined_call_operand.hbm [shape: f32[1,5], index: 2, kind: output, shape index: {}]  }
   0x1   :  { %8 = vsyncpa [#allocation4], 0  ;;  %s217_s9 = smov [#allocation2]   ;;  %s181_s13 = scalar_lea.hbm %s269_s0, 128 }
   0x2   :  { %s15_s10 = sshll.u32 %s217_s9, 4  ;;  %p182_p0 = scmp.ne.s32.totalorder %s269_s0, %s181_s13  ;;  %s16_s10 = int_to_ptr.vmem [resolvable:$true] %s15_s10 }
   0x3   :  { %p185_p1 = scmp.lt.u32.totalorder %s181_s13, %s269_s0 }
   0x5   :  { %p187_p2 = pnand %p185_p1, %p182_p0 }
   0x7   :  { %190 = shalt.err (!%p187_p2)
}
   0x8   :  { %s191_s18 = scalar_lea.vmem %s16_s10, 128  ;;  %p196_p4 = scmp.lt.s32.totalorder %s16_s10, %s16_s10 }
   0x9   :  { %p192_p3 = scmp.ne.s32.totalorder %s16_s10, %s191_s18  ;;  %p197_p5 = scmp.lt.s32.totalorder %s191_s18, %s191_s18 }
   0xb   :  { %p198_p6 = por %p197_p5, %p196_p4 }
   0xd   :  { %p199_p7 = pnand %p198_p6, %p192_p3 }
   0xf   :  { %202 = shalt.err (!%p199_p7)
}
  0x10   :  { %18 = dma.hbm_to_vmem [thread:$0]  %s269_s0, 128, %s16_s10, [#allocation3]  }
  0x11   :  { %213 = dma.done.wait [#allocation3], 128  }
  0x12   :  { %214 = vsyncadd [#allocation3], 4294967168  ;;  %v29_v0 = vlaneseq  ;;  %vm51_vm2 = vcmask 64512   ;;  %v25_v6 = vld [vmem:[#allocation2] sm:$0xff]  ;;  %vm92_vm4 = vcmask 7168   ;;  %s203_s28 = scalar_lea.hbm %s271_s2, 16 }
  0x13   :  { %v26_v7 = vld [vmem:[%s270_s1] sm:$0x3]  ;;  %p204_p8 = scmp.ne.s32.totalorder %s271_s2, %s203_s28  ;;  %p207_p9 = scmp.lt.u32.totalorder %s203_s28, %s271_s2 }
  0x14   :  { %v30_v1 = vshrl.u32 %v29_v0, 7  ;;  %v34_v2 = vand.u32 127, %v29_v0  ;;  %v27_v8 = vunpack.c.0.s8 %v26_v7 }
  0x15   :  { %p209_p10 = pnand %p207_p9, %p204_p8 }
  0x16   :  { %vm36_vm0 = vcmp.lt.s32.totalorder %v30_v1, 4  ;;  %v37_v3 = vadd.s32 4, %v30_v1  ;;  %v160_v4 = vadd.s32 4294967292, %v30_v1  ;;  %vm35_vm1 = vcmp.eq.s32.totalorder %v34_v2, %v30_v1 }
  0x17   :  { %v72_v9 = vsel %vm35_vm1, %v25_v6, 0.0  ;;  %v28_v13 = vcvt.s32.f32 %v27_v8 }
  0x18   :  { %v39_v5 = vsel %vm36_vm0, %v37_v3, %v160_v4  ;;  %v73_v11 = vsel %vm51_vm2, %v72_v9, 0.0 }
  0x19   :  { %vm40_vm3 = vcmp.eq.s32.totalorder %v34_v2, %v39_v5  ;;  %74 = vadd.xlane.f32.xlu0 %v73_v11  ;;  %v41_v14 = vmul.f32 %v28_v13, %v25_v6  ;;  %v76_v15 = vsel %vm35_vm1, %v28_v13, 0.0  ;;  %v62_v21 = vsel %vm51_vm2, %v28_v13, 0.0 }
  0x1a   :  { %v80_v10 = vsel %vm40_vm3, %v25_v6, 0.0  ;;  %v77_v16 = vsel %vm51_vm2, %v76_v15, 0.0  ;;  %v48_v23 = vsub.f32 0.0, %v28_v13 }
  0x1b   :  { %v81_v12 = vsel %vm51_vm2, %v80_v10, 0.0  ;;  %v42_v17 = vmax.f32 %v41_v14, 0.0 }
  0x1c   :  { %82 = vadd.xlane.f32.xlu1 %v81_v12 }
  0x1d   :  { %78 = vadd.xlane.f32.xlu0 %v77_v16  ;;  %v43_v18 = vmin.f32 %v42_v17, 1.0 }
  0x1f   :  { %v44_v19 = vsub.f32 1.0, %v43_v18 }
  0x21   :  { %173 = vlog2.f32 %v44_v19  ;;  %63 = vadd.xlane.f32.xlu0 %v62_v21 }
  0x2b   :  { %v174_v20 = vpop.eup %173 }
  0x2c   :  { %v46_v22 = vmul.f32 0.6931472, %v174_v20 }
  0x2e   :  { %v47_v24 = vmax.f32 %v46_v22, -100.0 }
  0x30   :  { %v49_v25 = vmul.f32 %v48_v23, %v47_v24 }
  0x32   :  { %v50_v26 = vsel %vm35_vm1, 0.0, %v49_v25 }
  0x33   :  { %v52_v27 = vsel %vm51_vm2, %v50_v26, 0.0 }
  0x34   :  { %53 = vadd.xlane.f32.xlu1 %v52_v27 }
  0xa6   :  { %v75_v28 = vpop.xlane.xlu0 %74 }
  0xa7   :  { %v103_v30 = vmax.f32 %v75_v28, 0.0 }
  0xa9   :  { %v83_v29 = vpop.xlane.xlu1 %82  ;;  %v104_v32 = vmin.f32 %v103_v30, 1.0 }
  0xaa   :  { %v105_v31 = vmax.f32 %v83_v29, 0.0  ;;  %v79_v34 = vpop.xlane.xlu0 %78 }
  0xab   :  { %175 = vlog2.f32 %v104_v32  ;;  %v84_v35 = vmul.f32 %v79_v34, %v75_v28  ;;  %v87_v49 = vsub.f32 0.0, %v79_v34 }
  0xac   :  { %v106_v33 = vmin.f32 %v105_v31, 1.0 }
  0xad   :  { %v85_v37 = vmax.f32 %v84_v35, 0.0 }
  0xae   :  { %v121_v36 = vsub.f32 1.0, %v106_v33  ;;  %v64_v55 = vpop.xlane.xlu0 %63 }
  0xaf   :  { %v86_v38 = vmin.f32 %v85_v37, 1.0  ;;  %v65_v56 = vrot.slane %v64_v55, 4 }
  0xb0   :  { %177 = vlog2.f32 %v121_v36 }
  0xb1   :  { %179 = vlog2.f32 %v86_v38  ;;  %v66_v59 = vadd.f32 %v65_v56, %v64_v55 }
  0xb3   :  { %v67_v62 = vrot.slane %v66_v59, 2 }
  0xb5   :  { %v176_v39 = vpop.eup %175  ;;  %v68_v2 = vadd.f32 %v67_v62, %v66_v59 }
  0xb6   :  { %v108_v40 = vmul.f32 0.6931472, %v176_v39 }
  0xb7   :  { %v69_v3 = vrot.slane %v68_v2, 1 }
  0xb8   :  { %v109_v42 = vmax.f32 %v108_v40, -100.0 }
  0xb9   :  { %v70_v4 = vadd.f32 %v69_v3, %v68_v2 }
  0xba   :  { %v178_v41 = vpop.eup %177  ;;  %v110_v44 = vsub.f32 0.0, %v109_v42 }
  0xbb   :  { %v123_v43 = vmul.f32 0.6931472, %v178_v41  ;;  %v180_v45 = vpop.eup %179 }
  0xbc   :  { %v111_v46 = vsel %vm92_vm4, %v110_v44, 0.0  ;;  %v89_v47 = vmul.f32 0.6931472, %v180_v45 }
  0xbd   :  { %v124_v48 = vmax.f32 %v123_v43, -100.0  ;;  %112 = vadd.xlane.f32.xlu0 %v111_v46 }
  0xbe   :  { %v90_v50 = vmax.f32 %v89_v47, -100.0 }
  0xbf   :  { %v125_v52 = vsub.f32 0.0, %v124_v48 }
  0xc0   :  { %v91_v51 = vmul.f32 %v90_v50, %v87_v49 }
  0xc1   :  { %v126_v54 = vsel %vm92_vm4, %v125_v52, 0.0  ;;  %v54_v57 = vpop.xlane.xlu1 %53 }
  0xc2   :  { %v93_v53 = vsel %vm92_vm4, %v91_v51, 0.0  ;;  %v55_v58 = vrot.slane %v54_v57, 4 }
  0xc3   :  { %94 = vadd.xlane.f32.xlu1 %v93_v53 }
  0xc4   :  { %v56_v60 = vadd.f32 %v55_v58, %v54_v57 }
  0xc6   :  { %v57_v61 = vrot.slane %v56_v60, 2 }
  0xc7   :  { %127 = vadd.xlane.f32.xlu1 %v126_v54 }
  0xc8   :  { %v58_v63 = vadd.f32 %v57_v61, %v56_v60 }
  0xca   :  { %v59_v0 = vrot.slane %v58_v63, 1 }
  0xcc   :  { %v60_v1 = vadd.f32 %v59_v0, %v58_v63 }
  0xce   :  { %161 = vpush %v60_v1 }
  0xcf   :  { %163 = vpush %v70_v4 }
  0xff   :  { %s162_s0 = spop %161 }
 0x100   :  { %137 = sst [smem:[#allocation5]] %s162_s0  ;;  %s164_s1 = spop %163 }
 0x101   :  { %139 = sst [smem:[#allocation5 + $0x1]] %s164_s1 }
 0x14a   :  { %v113_v5 = vpop.xlane.xlu0 %112 }
 0x14b   :  { %v114_v6 = vrot.slane %v113_v5, 4 }
 0x14d   :  { %v115_v7 = vadd.f32 %v114_v6, %v113_v5 }
 0x14f   :  { %v116_v8 = vrot.slane %v115_v7, 2 }
 0x150   :  { %v95_v9 = vpop.xlane.xlu1 %94 }
 0x151   :  { %v96_v10 = vrot.slane %v95_v9, 4  ;;  %v117_v12 = vadd.f32 %v116_v8, %v115_v7 }
 0x153   :  { %v97_v11 = vadd.f32 %v96_v10, %v95_v9  ;;  %v118_v18 = vrot.slane %v117_v12, 1 }
 0x154   :  { %v128_v13 = vpop.xlane.xlu1 %127 }
 0x155   :  { %v98_v14 = vrot.slane %v97_v11, 2  ;;  %v129_v15 = vrot.slane %v128_v13, 4  ;;  %v119_v23 = vadd.f32 %v118_v18, %v117_v12 }
 0x157   :  { %v130_v16 = vadd.f32 %v129_v15, %v128_v13  ;;  %v99_v17 = vadd.f32 %v98_v14, %v97_v11 }
 0x159   :  { %v131_v19 = vrot.slane %v130_v16, 2  ;;  %v100_v20 = vrot.slane %v99_v17, 1 }
 0x15b   :  { %v132_v21 = vadd.f32 %v131_v19, %v130_v16  ;;  %v101_v22 = vadd.f32 %v100_v20, %v99_v17 }
 0x15d   :  { %165 = vpush %v101_v22  ;;  %v133_v24 = vrot.slane %v132_v21, 1 }
 0x15e   :  { %167 = vpush %v119_v23 }
 0x15f   :  { %v134_v25 = vadd.f32 %v133_v24, %v132_v21 }
 0x161   :  { %169 = vpush %v134_v25 }
 0x18e   :  { %s166_s23 = spop %165 }
 0x18f   :  { %141 = sst [smem:[#allocation5 + $0x2]] %s166_s23  ;;  %s168_s24 = spop %167 }
 0x190   :  { %143 = sst [smem:[#allocation5 + $0x3]] %s168_s24 }
 0x192   :  { %s170_s25 = spop %169 }
 0x193   :  { %145 = sst [smem:[#allocation5 + $0x4]] %s170_s25 }
 0x194   :  { %212 = shalt.err (!%p209_p10)
}
 0x195   :  { %s218_s5 = smov [#allocation5]  }
 0x196   :  { %153 = dma.smem_to_hbm %s218_s5, 16, %s271_s2, [#allocation4]  }
 0x197   :  { %215 = dma.done.wait [#allocation4], 16  }
 0x198   :  { %216 = vsyncadd [#allocation4], 4294967280 }
 0x199   :  { %157 = sfence }
 0x19a   :  { %158 = vsyncpa [#allocation3], 1 }
 0x19b   :  { %159 = vsyncpa [#allocation4], 1 }

</bundles_post_ra>
